<compile_context>
chip_gen: v5e
topology: v5e:2x2
jax: 0.10.0
libtpu: 0.0.40
codegen_flags: <defaults>
</compile_context>

<pallas_src>
import functools
import math

import jax
import jax.numpy as jnp
from jax.experimental import pallas as pl
from jax.experimental.pallas import tpu as pltpu

LANE = 128     # vreg lane width -> channel dims padded to this (single lane block)
TILE_M = 128   # target-node rows per output tile
TILE_K = 128   # source-node rows per reduction tile (aggregation K axis)


def _round_up(n, m):
    return (n + m - 1) // m * m


def _bytes(shape, dtype):
    return int(math.prod(shape)) * jnp.dtype(dtype).itemsize


# ---------------------------------------------------------------------------
# Kernels
# ---------------------------------------------------------------------------
def _input_linear_kernel(x_ref, w_ref, b_ref, o_ref):
    # x tile (TILE_M, K_pad) bf16, w (K_pad, LANE) bf16 (BN folded), b (1, LANE) f32
    y = jnp.dot(x_ref[...], w_ref[...], preferred_element_type=jnp.float32)
    o_ref[...] = (y + b_ref[...]).astype(o_ref.dtype)


def _sage_conv_kernel(adj_ref, xsrc_ref, xtgt_ref, wl_ref, wr_ref, b_ref,
                      o_ref, acc_ref, *, apply_relu, apply_log_softmax,
                      out_channels):
    k = pl.program_id(1)

    @pl.when(k == 0)
    def _():
        acc_ref[...] = jnp.zeros_like(acc_ref)

    # mean aggregation: accumulate adjacency-tile @ x_src-tile on the MXU (f32 acc)
    acc_ref[...] += jnp.dot(adj_ref[...], xsrc_ref[...],
                            preferred_element_type=jnp.float32)

    @pl.when(k == pl.num_programs(1) - 1)
    def _():
        # two K=128 dots accumulated (no concat temp): agg @ W_l^T + x_tgt @ W_r^T
        agg = acc_ref[...].astype(jnp.bfloat16)
        y = jnp.dot(agg, wl_ref[...], preferred_element_type=jnp.float32)
        y = y + jnp.dot(xtgt_ref[...], wr_ref[...],
                        preferred_element_type=jnp.float32)
        y = y + b_ref[...]                       # b_l + b_r pre-summed on host (f32)
        if apply_relu:
            y = jnp.maximum(y, 0.0)              # dropout is identity in eval mode
        if apply_log_softmax:
            # fused log_softmax over the real (unpadded) channels only
            col = jax.lax.broadcasted_iota(jnp.int32, y.shape, 1)
            ym = jnp.where(col < out_channels, y, jnp.float32(-1e30))
            m = jnp.max(ym, axis=-1, keepdims=True)
            s = ym - m
            lse = jnp.log(jnp.sum(jnp.exp(s), axis=-1, keepdims=True))
            o_ref[...] = (s - lse).astype(o_ref.dtype)
        else:
            o_ref[...] = y.astype(o_ref.dtype)


# ---------------------------------------------------------------------------
# pallas_call wrappers (per layer, each with its own grid)
# ---------------------------------------------------------------------------
def _input_linear(x_pad, w_in, b_in, n_rows_pad):
    k_pad = x_pad.shape[1]
    grid = (n_rows_pad // TILE_M,)
    vmem = 2 * (_bytes((TILE_M, k_pad), jnp.bfloat16)
                + _bytes((k_pad, LANE), jnp.bfloat16)
                + _bytes((1, LANE), jnp.float32)
                + _bytes((TILE_M, LANE), jnp.bfloat16))
    cost = pl.CostEstimate(
        flops=2 * n_rows_pad * k_pad * LANE,
        transcendentals=0,
        bytes_accessed=int(x_pad.size * 2 + w_in.size * 2 + n_rows_pad * LANE * 2))
    return pl.pallas_call(
        _input_linear_kernel,
        out_shape=jax.ShapeDtypeStruct((n_rows_pad, LANE), jnp.bfloat16),
        grid=grid,
        in_specs=[pl.BlockSpec((TILE_M, k_pad), lambda i: (i, 0)),
                  pl.BlockSpec((k_pad, LANE), lambda i: (0, 0)),
                  pl.BlockSpec((1, LANE), lambda i: (0, 0))],
        out_specs=pl.BlockSpec((TILE_M, LANE), lambda i: (i, 0)),
        compiler_params=pltpu.CompilerParams(
            dimension_semantics=("parallel",),
            vmem_limit_bytes=int(vmem) + (8 << 20)),
        cost_estimate=cost,
    )(x_pad, w_in, b_in)


def _sage_layer(x, adj_pad, w_l, w_r, bias, n_tgt_pad, n_src_pad, *,
                apply_relu, apply_log_softmax, out_channels, out_dtype):
    grid = (n_tgt_pad // TILE_M, n_src_pad // TILE_K)
    kern = functools.partial(_sage_conv_kernel, apply_relu=apply_relu,
                             apply_log_softmax=apply_log_softmax,
                             out_channels=out_channels)
    in_specs = [
        pl.BlockSpec((TILE_M, TILE_K), lambda i, k: (i, k)),   # adjacency tile (streamed)
        pl.BlockSpec((TILE_K, LANE), lambda i, k: (k, 0)),     # x_src tile
        pl.BlockSpec((TILE_M, LANE), lambda i, k: (i, 0)),     # x_tgt tile (const in k)
        pl.BlockSpec((LANE, LANE), lambda i, k: (0, 0)),       # W_l^T (bf16)
        pl.BlockSpec((LANE, LANE), lambda i, k: (0, 0)),       # W_r^T (bf16)
        pl.BlockSpec((1, LANE), lambda i, k: (0, 0)),          # bias (f32)
    ]
    out_spec = pl.BlockSpec((TILE_M, LANE), lambda i, k: (i, 0))
    vmem = (2 * (_bytes((TILE_M, TILE_K), jnp.bfloat16)
                 + _bytes((TILE_K, LANE), jnp.bfloat16)
                 + _bytes((TILE_M, LANE), jnp.bfloat16)
                 + 2 * _bytes((LANE, LANE), jnp.bfloat16)
                 + _bytes((1, LANE), jnp.float32)
                 + _bytes((TILE_M, LANE), out_dtype))
            + _bytes((TILE_M, LANE), jnp.float32))
    cost = pl.CostEstimate(
        flops=2 * n_tgt_pad * n_src_pad * LANE + 4 * n_tgt_pad * LANE * LANE,
        transcendentals=int(n_tgt_pad * LANE if apply_log_softmax else 0),
        bytes_accessed=int(adj_pad.size * 2 + x.size * 2 + 2 * LANE * LANE * 2
                           + n_tgt_pad * LANE * jnp.dtype(out_dtype).itemsize))
    return pl.pallas_call(
        kern,
        out_shape=jax.ShapeDtypeStruct((n_tgt_pad, LANE), out_dtype),
        grid=grid,
        in_specs=in_specs,
        out_specs=out_spec,
        scratch_shapes=[pltpu.VMEM((TILE_M, LANE), jnp.float32)],
        compiler_params=pltpu.CompilerParams(
            dimension_semantics=("parallel", "arbitrary"),
            vmem_limit_bytes=int(vmem) + (8 << 20)),
        cost_estimate=cost,
    )(adj_pad, x, x, w_l, w_r, bias)


# ---------------------------------------------------------------------------
# One-time host-side prep: fold BN, transpose/pad/cast weights, build adjacency.
# ---------------------------------------------------------------------------
def build_mean_adj(edge_index, n_src, n_tgt):
    src, tgt = edge_index[0], edge_index[1]
    valid = (src >= 0) & (tgt >= 0)          # drop any padded (-1) edges safely
    w = valid.astype(jnp.float32)
    a = jnp.zeros((n_tgt, n_src), jnp.float32).at[
        jnp.clip(tgt, 0, n_tgt - 1), jnp.clip(src, 0, n_src - 1)].add(w)
    deg = jnp.sum(a, axis=1, keepdims=True)
    return a / jnp.maximum(deg, 1.0)


def prepare_params(params, adjs, in_channels):
    w_in, b_in = params["linear_input"]          # torch layout: (hidden, in_c), (hidden,)
    gamma, beta, r_mean, r_var, eps = params["bn"]
    hidden = w_in.shape[0]
    # single-lane-block layout: every channel dim must fit one 128-lane block.
    assert hidden <= LANE, "hidden_channels must be <= 128 for this layout"
    k_pad = _round_up(in_channels, LANE)

    scale = gamma / jnp.sqrt(r_var + eps)
    shift = beta - r_mean * scale
    # fold BN (eval): y = x @ (W^T * scale) + (b*scale + shift); pad K and lanes.
    w_in_f = w_in.T * scale[None, :]
    b_in_f = b_in * scale + shift
    w_in_pad = (jnp.zeros((k_pad, LANE), jnp.float32)
                .at[:in_channels, :hidden].set(w_in_f).astype(jnp.bfloat16))
    b_in_pad = jnp.zeros((1, LANE), jnp.float32).at[0, :hidden].set(b_in_f)

    layers = []
    prev_tgt = None
    for i, (edge_index, size) in enumerate(adjs):
        n_src, n_tgt = size
        if prev_tgt is not None:
            assert n_src == prev_tgt, "sampled layer sizes must chain (n_src_i == n_tgt_{i-1})"
        prev_tgt = n_tgt
        w_l, b_l, w_r, b_r = params["convs"][i]  # torch layout: (out_c, in_c)
        c_out, c_in = w_l.shape
        assert c_in <= LANE and c_out <= LANE, "conv channel dims must be <= 128"
        n_src_pad = _round_up(n_src, TILE_K)
        n_tgt_pad = _round_up(n_tgt, TILE_M)
        # dense row-normalized adjacency, zero-padded to tile multiples, bf16.
        # (padded cols/rows are zero so padded nodes never contaminate real rows)
        adj = build_mean_adj(edge_index, n_src, n_tgt)
        adj_pad = (jnp.zeros((n_tgt_pad, n_src_pad), jnp.float32)
                   .at[:n_tgt, :n_src].set(adj).astype(jnp.bfloat16))
        wl_pad = (jnp.zeros((LANE, LANE), jnp.float32)
                  .at[:c_in, :c_out].set(w_l.T).astype(jnp.bfloat16))
        wr_pad = (jnp.zeros((LANE, LANE), jnp.float32)
                  .at[:c_in, :c_out].set(w_r.T).astype(jnp.bfloat16))
        bias = jnp.zeros((1, LANE), jnp.float32).at[0, :c_out].set(b_l + b_r)
        layers.append(dict(adj=adj_pad, wl=wl_pad, wr=wr_pad, bias=bias,
                           n_src=n_src, n_tgt=n_tgt,
                           n_src_pad=n_src_pad, n_tgt_pad=n_tgt_pad))
    return dict(w_in=w_in_pad, b_in=b_in_pad, k_pad=k_pad,
                in_channels=in_channels, layers=layers)


def graphsage_forward(x, prepped, num_layers, out_channels, output_type="logit"):
    layers = prepped["layers"]
    n0 = x.shape[0]
    n0_pad = layers[0]["n_src_pad"]
    k_pad = prepped["k_pad"]
    # pad rows/features so every slice & store is sublane/lane dense; bf16 matmul operand
    x_pad = (jnp.zeros((n0_pad, k_pad), jnp.float32)
             .at[:n0, :prepped["in_channels"]].set(x).astype(jnp.bfloat16))

    h = _input_linear(x_pad, prepped["w_in"], prepped["b_in"], n0_pad)
    for i, layer in enumerate(layers):
        is_last = (i == num_layers - 1)
        h = _sage_layer(
            h, layer["adj"], layer["wl"], layer["wr"], layer["bias"],
            layer["n_tgt_pad"], layer["n_src_pad"],
            apply_relu=not is_last,
            apply_log_softmax=is_last and (output_type != "ebd"),
            out_channels=out_channels,
            out_dtype=jnp.float32 if is_last else jnp.bfloat16)
    n_out = layers[-1]["n_tgt"]
    return h[:n_out, :out_channels]


# ---------------------------------------------------------------------------
# Pure-JAX f32 reference (original module semantics) for a correctness check.
# ---------------------------------------------------------------------------
def _reference_forward(params, x, adjs_dense, num_layers, output_type="logit"):
    w_in, b_in = params["linear_input"]
    gamma, beta, r_mean, r_var, eps = params["bn"]
    z = x @ w_in.T + b_in
    z = (z - r_mean) / jnp.sqrt(r_var + eps) * gamma + beta
    for i, (adj, n_tgt) in enumerate(adjs_dense):
        x_tgt = z[:n_tgt]
        w_l, b_l, w_r, b_r = params["convs"][i]
        z = (adj @ z) @ w_l.T + b_l + x_tgt @ w_r.T + b_r
        if i != num_layers - 1:
            z = jnp.maximum(z, 0.0)
    if output_type == "ebd":
        return z
    return jax.nn.log_softmax(z, axis=-1).astype(jnp.float32)


# ---------------------------------------------------------------------------
# Deterministic parameter / input construction and a single run.
# ---------------------------------------------------------------------------
def _lin_init(key, out_c, in_c):
    # nn.Linear default init: U(-1/sqrt(fan_in), 1/sqrt(fan_in))
    kw, kb = jax.random.split(key)
    bound = 1.0 / math.sqrt(in_c)
    w = jax.random.uniform(kw, (out_c, in_c), jnp.float32, -bound, bound)
    b = jax.random.uniform(kb, (out_c,), jnp.float32, -bound, bound)
    return w, b


def _make_edges(n_src, n_tgt, fan):
    src, tgt = [], []
    for t in range(n_tgt):
        for j in range(fan):
            src.append((t * 3 + j) % n_src)
            tgt.append(t)
    return jnp.array([src, tgt], dtype=jnp.int32)


if __name__ == "__main__":
    key = jax.random.PRNGKey(0)
    in_channels, hidden_channels, out_channels = 16, 32, 16
    num_layers = 2
    n0, n1, n2 = 64, 32, 16   # NeighborSampler-style hop sizes

    keys = jax.random.split(key, 6)
    params = {
        "linear_input": _lin_init(keys[0], hidden_channels, in_channels),
        "bn": (
            jnp.ones((hidden_channels,), jnp.float32),   # gamma
            jnp.zeros((hidden_channels,), jnp.float32),  # beta
            jnp.zeros((hidden_channels,), jnp.float32),  # running_mean
            jnp.ones((hidden_channels,), jnp.float32),   # running_var
            1e-5,
        ),
        "convs": [
            _lin_init(keys[1], hidden_channels, hidden_channels)
            + _lin_init(keys[2], hidden_channels, hidden_channels),   # (W_l,b_l,W_r,b_r)
            _lin_init(keys[3], out_channels, hidden_channels)
            + _lin_init(keys[4], out_channels, hidden_channels),
        ],
    }

    x = jax.random.normal(keys[5], (n0, in_channels), jnp.float32)
    adjs = [
        (_make_edges(n0, n1, fan=4), (n0, n1)),
        (_make_edges(n1, n2, fan=4), (n1, n2)),
    ]

    # one-time host prep (BN fold, weight padding/casting, adjacency build+pad)
    prepped = prepare_params(params, adjs, in_channels)

    out = graphsage_forward(x, prepped, num_layers, out_channels, output_type="logit")
    out = jax.block_until_ready(out)
    assert out.shape == (n2, out_channels) and out.dtype == jnp.float32

    # correctness check vs. the f32 reference (bf16 matmul operands -> looser tol)
    adjs_dense = [(build_mean_adj(ei, s[0], s[1]), s[1]) for ei, s in adjs]
    ref = _reference_forward(params, x, adjs_dense, num_layers)
    assert bool(jnp.allclose(out, ref, atol=5e-2, rtol=5e-2)), "mismatch vs reference"
    # rows must be valid log-probabilities (log_softmax itself runs in f32)
    assert bool(jnp.allclose(jnp.sum(jnp.exp(out), axis=-1), 1.0, atol=1e-4))

    print("KERNEL_OK")
</pallas_src>

<mosaic_0001>
module attributes {stable_mosaic.version = 11 : i64} {
  func.func @_input_linear_kernel(%arg0: i32, %arg1: memref<128x128xbf16, #tpu.memory_space<vmem>>, %arg2: memref<128x128xbf16, #tpu.memory_space<vmem>>, %arg3: memref<1x128xf32, #tpu.memory_space<vmem>>, %arg4: memref<128x128xbf16, #tpu.memory_space<vmem>>) attributes {dimension_semantics = [#tpu.dimension_semantics<parallel>], iteration_bounds = array<i64: 1>, scalar_prefetch = 0 : i64, scratch_operands = 0 : i64, tpu.core_type = #tpu.core_type<tc>, window_params = [{transform_indices = @transform_0, window_bounds = array<i64: 128, 128>}, {pipeline_mode = #tpu.pipeline_mode<synchronous>, transform_indices = @transform_1, window_bounds = array<i64: 128, 128>}, {pipeline_mode = #tpu.pipeline_mode<synchronous>, transform_indices = @transform_2, window_bounds = array<i64: 1, 128>}, {transform_indices = @transform_3, window_bounds = array<i64: 128, 128>}]} {
    %c0 = arith.constant 0 : index
    %c0_0 = arith.constant 0 : index
    %0 = vector.load %arg1[%c0, %c0_0] : memref<128x128xbf16, #tpu.memory_space<vmem>>, vector<128x128xbf16>
    %c0_1 = arith.constant 0 : index
    %c0_2 = arith.constant 0 : index
    %1 = vector.load %arg2[%c0_1, %c0_2] : memref<128x128xbf16, #tpu.memory_space<vmem>>, vector<128x128xbf16>
    %cst = arith.constant dense<0.000000e+00> : vector<128x128xf32>
    %2 = tpu.matmul %0, %1, %cst {dimension_numbers = #tpu.dot_dimension_numbers<[1], [0], [0], [1], [0, 0, 1, 1], [], []>} : vector<128x128xbf16>, vector<128x128xbf16>, vector<128x128xf32> -> vector<128x128xf32>
    %c0_3 = arith.constant 0 : index
    %c0_4 = arith.constant 0 : index
    %3 = vector.load %arg3[%c0_3, %c0_4] : memref<1x128xf32, #tpu.memory_space<vmem>>, vector<1x128xf32>
    %4 = vector.broadcast %3 : vector<1x128xf32> to vector<128x128xf32>
    %5 = arith.addf %2, %4 : vector<128x128xf32>
    %6 = arith.truncf %5 : vector<128x128xf32> to vector<128x128xbf16>
    %c0_5 = arith.constant 0 : index
    %c0_6 = arith.constant 0 : index
    %7 = vector.load %arg4[%c0_5, %c0_6] : memref<128x128xbf16, #tpu.memory_space<vmem>>, vector<128x128xbf16>
    tpu.vector_store %arg4[%c0_5, %c0_6], %6 {strides = array<i32>} : memref<128x128xbf16, #tpu.memory_space<vmem>>, vector<128x128xbf16>,
    return
  }
  func.func @transform_0(%arg0: i32) -> (i32, i32) {
    %c0_i32 = arith.constant 0 : i32
    %c0_i32_0 = arith.constant 0 : i32
    return %arg0, %c0_i32 : i32, i32
  }
  func.func @transform_1(%arg0: i32) -> (i32, i32) {
    %c0_i32 = arith.constant 0 : i32
    %c0_i32_0 = arith.constant 0 : i32
    %c0_i32_1 = arith.constant 0 : i32
    return %c0_i32, %c0_i32_0 : i32, i32
  }
  func.func @transform_2(%arg0: i32) -> (i32, i32) {
    %c0_i32 = arith.constant 0 : i32
    %c0_i32_0 = arith.constant 0 : i32
    %c0_i32_1 = arith.constant 0 : i32
    return %c0_i32, %c0_i32_0 : i32, i32
  }
  func.func @transform_3(%arg0: i32) -> (i32, i32) {
    %c0_i32 = arith.constant 0 : i32
    %c0_i32_0 = arith.constant 0 : i32
    return %arg0, %c0_i32 : i32, i32
  }
}

</mosaic_0001>

<bundles_post_ra>
// kernel: tpu_custom_call.1
= control target key start
LH: loop header
LB: loop body
LE: loop exit
PB: predicated region body
PF: predicated region fallthrough
CT: control target
= control target key end

     0   :  { %8 = vsyncpa [#allocation3], 0  ;;  %s561_s0 = inlined_call_operand.hbm [shape: bf16[128,128], index: 0, kind: input, shape index: {}]   ;;  %s562_s1 = inlined_call_operand.hbm [shape: bf16[128,128], index: 1, kind: input, shape index: {}]   ;;  %s563_s2 = inlined_call_operand.vmem [shape: f32[1,128], index: 2, kind: input, shape index: {}]   ;;  %s564_s3 = inlined_call_operand.hbm [shape: bf16[128,128], index: 3, kind: output, shape index: {}]  }
   0x1   :  { %9 = vsyncpa [#allocation6], 0 }
   0x2   :  { %10 = vsyncpa [#allocation4], 0  ;;  %s15_s14 = sshll.u32 %s561_s0, 4  ;;  %s515_s15 = smov [#allocation2]   ;;  %s16_s14 = int_to_ptr.hbm [resolvable:$true] %s15_s14 }
   0x3   :  { %s17_s16 = sshll.u32 %s515_s15, 4  ;;  %s28_s19 = sshll.u32 %s562_s1, 4  ;;  %s18_s16 = int_to_ptr.vmem [resolvable:$true] %s17_s16  ;;  %s29_s19 = int_to_ptr.hbm [resolvable:$true] %s28_s19 }
   0x4   :  { %s516_s20 = smov 64   ;;  %s517_s21 = smov 4  }
   0x5   :  { %23 = dma.hbm_to_vmem [thread:$0]  %s16_s14, 1024, %s18_s16, [#allocation3], %s516_s20, %s516_s20, %s517_s21  }
   0x6   :  { %s518_s22 = smov [#allocation5]  }
   0x7   :  { %s30_s23 = sshll.u32 %s518_s22, 4  ;;  %s31_s23 = int_to_ptr.vmem [resolvable:$true] %s30_s23 }
   0x8   :  { %36 = dma.hbm_to_vmem [thread:$0]  %s29_s19, 1024, %s31_s23, [#allocation6], %s516_s20, %s516_s20, %s517_s21  }
   0x9   :  { %509 = dma.done.wait [#allocation3], 1024  }
   0xa   :  { %510 = vsyncadd [#allocation3], 4294966272 }
   0xb   :  { %511 = dma.done.wait [#allocation6], 1024  }
   0xc   :  { %512 = vsyncadd [#allocation6], 4294966272  ;;  %v359_v0 = vld [vmem:[#allocation5 + $0x38] sm:$0xff]  ;;  %v358_v1 = vld [vmem:[#allocation5 + $0x30] sm:$0xff]  ;;  %s266_s27 = sshll.u32 %s564_s3, 4  ;;  %s267_s27 = int_to_ptr.hbm [resolvable:$true] %s266_s27 }
   0xd   :  { %179 = vmatpush.bf16.msra.mxu0 %v359_v0  ;;  %407 = vmatpush.bf16.msra.mxu1 %v359_v0  ;;  %v357_v2 = vld [vmem:[#allocation5 + $0x28] sm:$0xff]  ;;  %v356_v3 = vld [vmem:[#allocation5 + $0x20] sm:$0xff]  ;;  %v355_v4 = vld [vmem:[#allocation5 + $0x18] sm:$0xff] }
   0xe   :  { %408 = vmatpush.bf16.msra.mxu2 %v359_v0  ;;  %409 = vmatpush.bf16.msra.mxu3 %v359_v0  ;;  %v354_v5 = vld [vmem:[#allocation5 + $0x10] sm:$0xff]  ;;  %v353_v6 = vld [vmem:[#allocation5 + $0x8] sm:$0xff]  ;;  %v352_v7 = vld [vmem:[#allocation5] sm:$0xff] }
   0xf   :  { %v344_v8 = vld [vmem:[#allocation2] sm:$0xff]  ;;  %v346_v9 = vld [vmem:[#allocation2 + $0x10] sm:$0xff]  ;;  %v345_v12 = vld [vmem:[#allocation2 + $0x8] sm:$0xff] }
  0x10   :  { %v348_v10 = vld [vmem:[#allocation2 + $0x20] sm:$0xff]  ;;  %v350_v11 = vld [vmem:[#allocation2 + $0x30] sm:$0xff]  ;;  %v347_v13 = vld [vmem:[#allocation2 + $0x18] sm:$0xff] }
  0x11   :  { %180 = vmatpush.bf16.msra.mxu0 %v358_v1  ;;  %410 = vmatpush.bf16.msra.mxu1 %v358_v1  ;;  %v349_v14 = vld [vmem:[#allocation2 + $0x28] sm:$0xff]  ;;  %v351_v15 = vld [vmem:[#allocation2 + $0x38] sm:$0xff]  ;;  %v436_v18 = vld [vmem:[%s563_s2] ss:$0 sm:$0xff]  ;;  %s519_s2 = smov [#allocation7]  }
  0x12   :  { %411 = vmatpush.bf16.msra.mxu2 %v358_v1  ;;  %412 = vmatpush.bf16.msra.mxu3 %v358_v1  ;;  %s264_s24 = sshll.u32 %s519_s2, 4  ;;  %s265_s24 = int_to_ptr.vmem [resolvable:$true] %s264_s24 }
  0x15   :  { %181 = vmatpush.bf16.msra.mxu0 %v357_v2  ;;  %413 = vmatpush.bf16.msra.mxu1 %v357_v2 }
  0x16   :  { %414 = vmatpush.bf16.msra.mxu2 %v357_v2  ;;  %415 = vmatpush.bf16.msra.mxu3 %v357_v2 }
  0x19   :  { %182 = vmatpush.bf16.msra.mxu0 %v356_v3  ;;  %416 = vmatpush.bf16.msra.mxu1 %v356_v3 }
  0x1a   :  { %417 = vmatpush.bf16.msra.mxu2 %v356_v3  ;;  %418 = vmatpush.bf16.msra.mxu3 %v356_v3 }
  0x1d   :  { %183 = vmatpush.bf16.msra.mxu0 %v355_v4  ;;  %419 = vmatpush.bf16.msra.mxu1 %v355_v4 }
  0x1e   :  { %420 = vmatpush.bf16.msra.mxu2 %v355_v4  ;;  %421 = vmatpush.bf16.msra.mxu3 %v355_v4 }
  0x21   :  { %184 = vmatpush.bf16.msra.mxu0 %v354_v5  ;;  %422 = vmatpush.bf16.msra.mxu1 %v354_v5 }
  0x22   :  { %423 = vmatpush.bf16.msra.mxu2 %v354_v5  ;;  %424 = vmatpush.bf16.msra.mxu3 %v354_v5 }
  0x25   :  { %185 = vmatpush.bf16.msra.mxu0 %v353_v6  ;;  %425 = vmatpush.bf16.msra.mxu1 %v353_v6 }
  0x26   :  { %426 = vmatpush.bf16.msra.mxu2 %v353_v6  ;;  %427 = vmatpush.bf16.msra.mxu3 %v353_v6 }
  0x29   :  { %186 = vmatpush.bf16.msra.mxu0 %v352_v7  ;;  %428 = vmatpush.bf16.msra.mxu1 %v352_v7 }
  0x2a   :  { %429 = vmatpush.bf16.msra.mxu2 %v352_v7  ;;  %430 = vmatpush.bf16.msra.mxu3 %v352_v7 }
  0x2c   :  { %187 = vmatmul.bf16.vlgmr.msra.gmra.mxu0 %v344_v8  ;;  %197 = vmatmul.bf16.vlgmr.msra.gmra.mxu1 %v346_v9 }
  0x2d   :  { %207 = vmatmul.bf16.vlgmr.msra.gmra.mxu2 %v348_v10  ;;  %217 = vmatmul.bf16.vlgmr.msra.gmra.mxu3 %v350_v11 }
  0x3c   :  { %192 = vmatmul.bf16.gmra.mxu0 %v345_v12  ;;  %202 = vmatmul.bf16.gmra.mxu1 %v347_v13 }
  0x3d   :  { %212 = vmatmul.bf16.gmra.mxu2 %v349_v14  ;;  %222 = vmatmul.bf16.gmra.mxu3 %v351_v15 }
  0xa9   :  { %v188_v16 = vpop.f32.mrf.mxu0  ;;  %v198_v17 = vpop.f32.mrf.mxu1 }
  0xaa   :  { %v189_v23 = vadd.f32 %v436_v18, %v188_v16  ;;  %v199_v24 = vadd.f32 %v436_v18, %v198_v17 }
  0xb0   :  { %v208_v19 = vpop.f32.mrf.mxu2  ;;  %v218_v20 = vpop.f32.mrf.mxu3 }
  0xb1   :  { %v190_v21 = vpop.f32.mrf.mxu0  ;;  %v200_v22 = vpop.f32.mrf.mxu1  ;;  %v209_v31 = vadd.f32 %v436_v18, %v208_v19  ;;  %v219_v32 = vadd.f32 %v436_v18, %v218_v20 }
  0xb2   :  { %v191_v25 = vadd.f32 %v436_v18, %v190_v21  ;;  %v201_v26 = vadd.f32 %v436_v18, %v200_v22 }
  0xb4   :  { %v363_v27 = vpack.c.bf16 %v191_v25, %v189_v23  ;;  %v373_v28 = vpack.c.bf16 %v201_v26, %v199_v24 }
  0xb6   :  { %364 = vst [vmem:[#allocation7] sm:$0xff] %v363_v27  }
  0xb7   :  { %401 = vst [vmem:[#allocation7 + $0x10] sm:$0xff] %v373_v28  }
  0xb8   :  { %v210_v29 = vpop.f32.mrf.mxu2  ;;  %v220_v30 = vpop.f32.mrf.mxu3 }
  0xb9   :  { %v211_v33 = vadd.f32 %v436_v18, %v210_v29  ;;  %v221_v34 = vadd.f32 %v436_v18, %v220_v30  ;;  %v193_v35 = vpop.f32.mrf.mxu0  ;;  %v203_v36 = vpop.f32.mrf.mxu1 }
  0xba   :  { %v194_v43 = vadd.f32 %v436_v18, %v193_v35  ;;  %v204_v44 = vadd.f32 %v436_v18, %v203_v36 }
  0xbb   :  { %v383_v37 = vpack.c.bf16 %v211_v33, %v209_v31  ;;  %v393_v38 = vpack.c.bf16 %v221_v34, %v219_v32 }
  0xbd   :  { %403 = vst [vmem:[#allocation7 + $0x20] sm:$0xff] %v383_v37  }
  0xbe   :  { %405 = vst [vmem:[#allocation7 + $0x30] sm:$0xff] %v393_v38  }
  0xc0   :  { %v213_v39 = vpop.f32.mrf.mxu2  ;;  %v223_v40 = vpop.f32.mrf.mxu3 }
  0xc1   :  { %v195_v41 = vpop.f32.mrf.mxu0  ;;  %v205_v42 = vpop.f32.mrf.mxu1  ;;  %v214_v51 = vadd.f32 %v436_v18, %v213_v39  ;;  %v224_v52 = vadd.f32 %v436_v18, %v223_v40 }
  0xc2   :  { %v196_v45 = vadd.f32 %v436_v18, %v195_v41  ;;  %v206_v46 = vadd.f32 %v436_v18, %v205_v42 }
  0xc4   :  { %v368_v47 = vpack.c.bf16 %v196_v45, %v194_v43  ;;  %v378_v48 = vpack.c.bf16 %v206_v46, %v204_v44 }
  0xc6   :  { %400 = vst [vmem:[#allocation7 + $0x8] sm:$0xff] %v368_v47  }
  0xc7   :  { %402 = vst [vmem:[#allocation7 + $0x18] sm:$0xff] %v378_v48  }
  0xc8   :  { %v215_v49 = vpop.f32.mrf.mxu2  ;;  %v225_v50 = vpop.f32.mrf.mxu3 }
  0xc9   :  { %v216_v53 = vadd.f32 %v436_v18, %v215_v49  ;;  %v226_v54 = vadd.f32 %v436_v18, %v225_v50 }
  0xcb   :  { %v388_v55 = vpack.c.bf16 %v216_v53, %v214_v51  ;;  %v398_v56 = vpack.c.bf16 %v226_v54, %v224_v52 }
  0xcd   :  { %404 = vst [vmem:[#allocation7 + $0x28] sm:$0xff] %v388_v55  }
  0xce   :  { %406 = vst [vmem:[#allocation7 + $0x38] sm:$0xff] %v398_v56  }
  0xcf   :  { %272 = dma.vmem_to_hbm [thread:$0]  %s265_s24, 1024, %s267_s27, [#allocation4], %s516_s20, %s516_s20, %s517_s21  }
  0xd0   :  { %513 = dma.done.wait [#allocation4], 1024  }
  0xd1   :  { %514 = vsyncadd [#allocation4], 4294966272 }
  0xd2   :  { %277 = vsyncpa [#allocation3], 1 }
  0xd3   :  { %278 = vsyncpa [#allocation6], 1 }
  0xd4   :  { %279 = vsyncpa [#allocation4], 1 }

</bundles_post_ra>
